<compile_context>
chip_gen: v7x
topology: tpu7x:2x2x1
jax: 0.10.0
libtpu: 0.0.40
codegen_flags: <defaults>
</compile_context>

<pallas_src>
import functools

import numpy as np
import jax
import jax.numpy as jnp
from jax.experimental import pallas as pl
from jax.experimental.pallas import tpu as pltpu


# ----------------------------------------------------------------------------
# db4 filter bank (pywt convention), hardcoded deterministically.
# ----------------------------------------------------------------------------
_DB4_REC_LO = np.array([
    0.23037781330885523, 0.7148465705525415, 0.6308807679295904,
    -0.02798376941698385, -0.18703481171888114, 0.030841381835986965,
    0.032883011666982945, -0.010597401784997278], dtype=np.float64)


def _filters():
    rec_lo = _DB4_REC_LO
    F = len(rec_lo)
    dec_lo = rec_lo[::-1].copy()
    rec_hi = np.array([(-1.0) ** k * rec_lo[F - 1 - k] for k in range(F)])
    dec_hi = rec_hi[::-1].copy()
    return dec_lo, dec_hi, rec_lo, rec_hi


def _sym_idx(i, n):
    # pywt 'symmetric' (half-sample) boundary extension index.
    p = 2 * n
    i = i % p
    return i if i < n else p - 1 - i


def _analysis_matrix(n, dec_lo, dec_hi):
    # One DWT level: coeff[k] = sum_j dec[j] * x_sym(2k + 1 - j)
    F = len(dec_lo)
    lout = (n + F - 1) // 2
    A = np.zeros((n, 2 * lout), dtype=np.float64)
    for k in range(lout):
        for j in range(F):
            src = _sym_idx(2 * k + 1 - j, n)
            A[src, k] += dec_lo[j]
            A[src, lout + k] += dec_hi[j]
    return A, lout


def _synthesis_matrices(L, rec_lo, rec_hi):
    # idwt(cA, cD) (each length L) -> output length 2L - F + 2
    # out[t] = sum_m cA[m]*rec_lo[t+F-2-2m] + cD[m]*rec_hi[t+F-2-2m]
    F = len(rec_lo)
    out_len = 2 * L - F + 2
    SA = np.zeros((L, out_len), dtype=np.float64)
    SD = np.zeros((L, out_len), dtype=np.float64)
    for t in range(out_len):
        for m in range(L):
            idx = t + F - 2 - 2 * m
            if 0 <= idx < F:
                SA[m, t] = rec_lo[idx]
                SD[m, t] = rec_hi[idx]
    return SA, SD, out_len


def _compose_matrix(L, level, keep_detail):
    """Compose wavedec -> (zero selected detail coeffs) -> waverec -> fit-to-L
    into a single [L, L] matrix (host-side float64).  `keep_detail(s)` says
    whether cD_{level - s} is kept (s = 0 is the deepest detail level)."""
    dec_lo, dec_hi, rec_lo, rec_hi = _filters()
    cur = np.eye(L, dtype=np.float64)          # map x -> current approximation
    lens = [L]
    det_maps = []
    n = L
    for _ in range(level):
        A, lout = _analysis_matrix(n, dec_lo, dec_hi)
        y = cur @ A
        cur = y[:, :lout]
        det_maps.append(y[:, lout:])
        lens.append(lout)
        n = lout
    dets = det_maps[::-1]                      # waverec order: cD_level ... cD_1
    rec = cur                                  # cA_level map
    a_len = lens[level]
    for s in range(level):
        d_len = lens[level - s]
        if a_len == d_len + 1:                 # pywt "a = a[:-1]" trimming rule
            rec = rec[:, :d_len]
        elif a_len != d_len:
            raise ValueError("inconsistent coefficient lengths")
        SA, SD, out_len = _synthesis_matrices(d_len, rec_lo, rec_hi)
        new = rec @ SA
        if keep_detail(s):
            new = new + dets[s] @ SD
        rec = new
        a_len = out_len
    final_len = rec.shape[1]
    if final_len >= L:
        return rec[:, :L], final_len
    return np.pad(rec, ((0, 0), (0, L - final_len))), final_len


@functools.lru_cache(maxsize=None)
def _physio_matrix_padded(L, level, Lp, dtype_str):
    # physio keeps coeffs[j] for j <= 2: cA_level, cD_level, cD_{level-1}.
    P, final_len = _compose_matrix(L, level, keep_detail=lambda s: s < 2)
    # db4 + symmetric mode reconstruction never shortens the signal, which is
    # what makes identity = x - physio exact; guard the assumption anyway.
    assert final_len >= L
    Pp = np.zeros((Lp, Lp), dtype=np.float32)
    Pp[:L, :L] = P.astype(np.float32)
    return jnp.asarray(Pp, dtype=jnp.dtype(dtype_str))   # cached, device-resident


# ----------------------------------------------------------------------------
# Pallas kernel: one composed matmul + one f32 subtract per (row, lane) tile.
# ----------------------------------------------------------------------------
def _physio_kernel(x_full_ref, p_ref, physio_ref, identity_ref, *,
                   col_axis, tn, tile_is_full, p_dtype):
    # x_full : (TB, Lp)  f32 full-contraction row block of x (stays resident
    #                    across whichever grid axis is innermost for it)
    # p      : (Lp, TN)  column slab of the composed physio matrix (bf16)
    x_full = x_full_ref[...]
    physio = jnp.dot(x_full.astype(p_dtype), p_ref[...],
                     preferred_element_type=jnp.float32)
    physio_ref[...] = physio
    # Slice the matching lane tile of x out of the resident row block
    # (no duplicate x input stream).  Offset is statically 128-aligned.
    if tile_is_full:
        x_tile = x_full
    else:
        off = pl.multiple_of(pl.program_id(col_axis) * tn, 128)
        x_tile = x_full_ref[:, pl.ds(off, tn)]
    # Linearity + perfect reconstruction: waverec(identity coeffs) = x - physio.
    identity_ref[...] = x_tile - physio


def _round_up(x, m):
    return (x + m - 1) // m * m


def _vmem_budget_bytes():
    cap = 64 << 20                               # conservative default (v7x)
    try:
        cap = int(pltpu.get_tpu_info().vmem_capacity_bytes)
    except Exception:
        pass
    # Leave ~16 MiB headroom for compiler scratch / semaphores / 2nd buffers.
    return max(32 << 20, cap - (16 << 20))


def _vmem_footprint(TB, TN, Lp, p_bytes):
    x_bufs = 2 * TB * Lp * 4          # double-buffered f32 x row block
    x_cast = TB * Lp * 2              # in-kernel bf16 cast temp for the MXU
    p_bufs = 2 * Lp * TN * p_bytes    # double-buffered P column slab
    o_bufs = 2 * 2 * TB * TN * 4      # two f32 outputs, double-buffered
    return x_bufs + x_cast + p_bufs + o_bufs + (4 << 20)


def wavelet_decompose(x, level=4, p_dtype=jnp.bfloat16):
    """x: [B, C, L] array. Returns {'physio': [B,1,L], 'identity': [B,1,L]}."""
    B, _, L = x.shape
    L = int(L)
    B = int(B)
    p_bytes = jnp.dtype(p_dtype).itemsize
    budget = _vmem_budget_bytes()

    # --- padded length & lane tile --------------------------------------
    if L <= 512:
        Lp = max(128, _round_up(L, 128))
        TN = Lp
    else:
        Lp = _round_up(L, 512)
        if budget >= (96 << 20) and Lp % 1024 == 0:
            TN = 1024                            # bigger slabs on v5e/v6e
        else:
            TN = 512

    # --- batch tile ------------------------------------------------------
    if B >= 256:
        TB = 256
    elif B >= 128:
        TB = 128
    else:
        TB = _round_up(B, 8)

    # Shrink tiles until the double-buffered footprint fits the VMEM budget
    # (v7x: ~48 MiB usable; v5e/v6e: ~112 MiB).
    while _vmem_footprint(TB, TN, Lp, p_bytes) > budget:
        if TN >= 256 and TN % 256 == 0:
            TN //= 2
        elif TB > 8:
            TB //= 2
        else:
            break

    Bp = _round_up(B, TB)
    rows = Bp // TB
    cols = Lp // TN

    # Give the v7x megacore (2 TCs) at least 2 parallel blocks when cheap.
    if rows * cols == 1:
        if Lp >= 256 and Lp % 256 == 0:
            TN = Lp // 2
        elif Bp >= 16 and (Bp // 2) % 8 == 0:
            TB = Bp // 2
        rows = Bp // TB
        cols = Lp // TN

    # --- pick the loop nesting that minimizes HBM re-read traffic --------
    # row-outer: x row block resident across inner col axis.
    traffic_row_outer = Bp * Lp * 4 + rows * Lp * Lp * p_bytes
    # col-outer: P column slab resident across inner row axis.
    traffic_col_outer = Lp * Lp * p_bytes + cols * Bp * Lp * 4
    p_resident = traffic_col_outer < traffic_row_outer

    P_pad = _physio_matrix_padded(L, int(level), Lp, jnp.dtype(p_dtype).name)

    x2d = x[:, 0, :].astype(jnp.float32)
    if (Bp, Lp) == (B, L):
        x_pad = x2d                               # skip the pad materialization
    else:
        x_pad = jnp.zeros((Bp, Lp), jnp.float32).at[:B, :L].set(x2d)

    if p_resident:
        grid = (cols, rows)
        col_axis = 0
        x_spec = pl.BlockSpec((TB, Lp), lambda j, i: (i, 0))
        p_spec = pl.BlockSpec((Lp, TN), lambda j, i: (0, j))
        o_spec = pl.BlockSpec((TB, TN), lambda j, i: (i, j))
    else:
        grid = (rows, cols)
        col_axis = 1
        x_spec = pl.BlockSpec((TB, Lp), lambda i, j: (i, 0))
        p_spec = pl.BlockSpec((Lp, TN), lambda i, j: (0, j))
        o_spec = pl.BlockSpec((TB, TN), lambda i, j: (i, j))

    kernel = functools.partial(
        _physio_kernel, col_axis=col_axis, tn=TN,
        tile_is_full=(TN == Lp), p_dtype=p_dtype)

    footprint = _vmem_footprint(TB, TN, Lp, p_bytes)
    vmem_limit = int(min(max(footprint, 32 << 20), budget))

    in_bytes = min(traffic_row_outer, traffic_col_outer)
    cost = pl.CostEstimate(flops=2 * Bp * Lp * Lp + Bp * Lp,
                           transcendentals=0,
                           bytes_accessed=int(in_bytes + 2 * Bp * Lp * 4))

    physio_pad, identity_pad = pl.pallas_call(
        kernel,
        out_shape=[jax.ShapeDtypeStruct((Bp, Lp), jnp.float32),
                   jax.ShapeDtypeStruct((Bp, Lp), jnp.float32)],
        grid=grid,
        in_specs=[x_spec, p_spec],
        out_specs=[o_spec, o_spec],
        compiler_params=pltpu.CompilerParams(
            dimension_semantics=("parallel", "parallel"),
            vmem_limit_bytes=vmem_limit),
        cost_estimate=cost,
    )(x_pad, P_pad)

    physio = physio_pad[:B, :L][:, None, :]
    identity = identity_pad[:B, :L][:, None, :]
    return {'physio': physio, 'identity': identity}


# ----------------------------------------------------------------------------
# Self-test
# ----------------------------------------------------------------------------
def _check_case(key, B, L, check_pr=False):
    x = jax.random.normal(key, (B, 1, L), dtype=jnp.float32)
    out = wavelet_decompose(x)
    physio = np.asarray(jax.block_until_ready(out['physio']))
    identity = np.asarray(jax.block_until_ready(out['identity']))

    assert physio.shape == (B, 1, L) and physio.dtype == np.float32
    assert identity.shape == (B, 1, L) and identity.dtype == np.float32

    # Host reference: same composed linear operator evaluated in float64.
    P_ref, _ = _compose_matrix(L, 4, keep_detail=lambda s: s < 2)
    x_np = np.asarray(x[:, 0, :], dtype=np.float64)
    physio_ref = x_np @ P_ref
    identity_ref = x_np - physio_ref
    # bf16 P streaming -> ~1e-2 scale error budget vs the f64 reference.
    err_p = float(np.abs(physio[:, 0, :] - physio_ref).max())
    err_i = float(np.abs(identity[:, 0, :] - identity_ref).max())
    assert err_p < 5e-2, err_p
    assert err_i < 5e-2, err_i

    if check_pr:
        # Sanity 1: keeping ALL coefficients composes to the identity map
        # (perfect reconstruction), which justifies identity = x - physio.
        R_full, _ = _compose_matrix(L, 4, keep_detail=lambda s: True)
        assert np.allclose(R_full, np.eye(L), atol=1e-6)

    # Sanity 2: physio + identity recovers the input signal exactly (f32),
    # since the identity branch is computed as x_f32 - physio in-kernel.
    recon = physio[:, 0, :] + identity[:, 0, :]
    assert np.allclose(recon, np.asarray(x[:, 0, :]), atol=1e-5), \
        float(np.abs(recon - np.asarray(x[:, 0, :])).max())


if __name__ == "__main__":
    key = jax.random.PRNGKey(0)
    k1, k2 = jax.random.split(key)

    # Small canonical shape matching the module's [B, 1, L] signal input.
    _check_case(k1, B=2, L=16, check_pr=True)
    # Non-aligned length exercises padding + multi-block lane grid.
    _check_case(k2, B=3, L=200, check_pr=False)

    print("KERNEL_OK")
</pallas_src>

<mosaic_0001>
module attributes {stable_mosaic.version = 11 : i64} {
  func.func @_physio_kernel(%arg0: i32, %arg1: i32, %arg2: memref<8x128xf32, #tpu.memory_space<vmem>>, %arg3: memref<128x128xbf16, #tpu.memory_space<vmem>>, %arg4: memref<8x128xf32, #tpu.memory_space<vmem>>, %arg5: memref<8x128xf32, #tpu.memory_space<vmem>>) attributes {dimension_semantics = [#tpu.dimension_semantics<parallel>, #tpu.dimension_semantics<parallel>], iteration_bounds = array<i64: 1, 1>, scalar_prefetch = 0 : i64, scratch_operands = 0 : i64, tpu.core_type = #tpu.core_type<tc>, window_params = [{transform_indices = @transform_0, window_bounds = array<i64: 8, 128>}, {transform_indices = @transform_1, window_bounds = array<i64: 128, 128>}, {transform_indices = @transform_2, window_bounds = array<i64: 8, 128>}, {transform_indices = @transform_3, window_bounds = array<i64: 8, 128>}]} {
    %c0 = arith.constant 0 : index
    %c0_0 = arith.constant 0 : index
    %0 = vector.load %arg2[%c0, %c0_0] : memref<8x128xf32, #tpu.memory_space<vmem>>, vector<8x128xf32>
    %1 = arith.truncf %0 : vector<8x128xf32> to vector<8x128xbf16>
    %c0_1 = arith.constant 0 : index
    %c0_2 = arith.constant 0 : index
    %2 = vector.load %arg3[%c0_1, %c0_2] : memref<128x128xbf16, #tpu.memory_space<vmem>>, vector<128x128xbf16>
    %cst = arith.constant dense<0.000000e+00> : vector<8x128xf32>
    %3 = tpu.matmul %1, %2, %cst {dimension_numbers = #tpu.dot_dimension_numbers<[1], [0], [0], [1], [0, 0, 1, 1], [], []>} : vector<8x128xbf16>, vector<128x128xbf16>, vector<8x128xf32> -> vector<8x128xf32>
    %c0_3 = arith.constant 0 : index
    %c0_4 = arith.constant 0 : index
    %4 = vector.load %arg4[%c0_3, %c0_4] : memref<8x128xf32, #tpu.memory_space<vmem>>, vector<8x128xf32>
    tpu.vector_store %arg4[%c0_3, %c0_4], %3 {strides = array<i32>} : memref<8x128xf32, #tpu.memory_space<vmem>>, vector<8x128xf32>,
    %5 = arith.subf %0, %3 : vector<8x128xf32>
    %c0_5 = arith.constant 0 : index
    %c0_6 = arith.constant 0 : index
    %6 = vector.load %arg5[%c0_5, %c0_6] : memref<8x128xf32, #tpu.memory_space<vmem>>, vector<8x128xf32>
    tpu.vector_store %arg5[%c0_5, %c0_6], %5 {strides = array<i32>} : memref<8x128xf32, #tpu.memory_space<vmem>>, vector<8x128xf32>,
    return
  }
  func.func @transform_0(%arg0: i32, %arg1: i32) -> (i32, i32) {
    %c0_i32 = arith.constant 0 : i32
    %c0_i32_0 = arith.constant 0 : i32
    return %arg0, %c0_i32 : i32, i32
  }
  func.func @transform_1(%arg0: i32, %arg1: i32) -> (i32, i32) {
    %c0_i32 = arith.constant 0 : i32
    %c0_i32_0 = arith.constant 0 : i32
    return %c0_i32, %arg1 : i32, i32
  }
  func.func @transform_2(%arg0: i32, %arg1: i32) -> (i32, i32) {
    %c0_i32 = arith.constant 0 : i32
    return %arg0, %arg1 : i32, i32
  }
  func.func @transform_3(%arg0: i32, %arg1: i32) -> (i32, i32) {
    %c0_i32 = arith.constant 0 : i32
    return %arg0, %arg1 : i32, i32
  }
}

</mosaic_0001>

<bundles_post_ra>
// kernel: tpu_custom_call.1
= control target key start
LH: loop header
LB: loop body
LE: loop exit
PB: predicated region body
PF: predicated region fallthrough
CT: control target
= control target key end

     0   :  { %9 = vsyncpa [#allocation3], 0  ;;  %s420_s0 = inlined_call_operand.hbm [shape: f32[8,128], index: 0, kind: input, shape index: {}]   ;;  %s421_s1 = inlined_call_operand.hbm [shape: bf16[128,128], index: 1, kind: input, shape index: {}]   ;;  %s422_s2 = inlined_call_operand.hbm [shape: f32[8,128], index: 2, kind: output, shape index: {0}]   ;;  %s423_s3 = inlined_call_operand.hbm [shape: f32[8,128], index: 3, kind: output, shape index: {1}]  }
   0x1   :  { %10 = vsyncpa [#allocation6], 0 }
   0x2   :  { %11 = vsyncpa [#allocation4], 0 }
   0x3   :  { %12 = vsyncpa [#allocation9], 0  ;;  %s330_s12 = smov [#allocation2]   ;;  %s331_s14 = smov [#allocation5]  }
   0x4   :  { %s19_s13 = sshll.u32 %s330_s12, 4  ;;  %s28_s15 = sshll.u32 %s331_s14, 4  ;;  %s20_s13 = int_to_ptr.vmem [resolvable:$true] %s19_s13  ;;  %s358_s15 = int_to_ptr.vmem [resolvable:$true] %s28_s15 }
   0x5   :  { %s234_s18 = scalar_lea.hbm %s420_s0, 128 }
   0x6   :  { %p235_p0 = scmp.ne.s32.totalorder %s420_s0, %s234_s18  ;;  %p238_p1 = scmp.lt.u32.totalorder %s234_s18, %s420_s0 }
   0x8   :  { %p240_p2 = pnand %p238_p1, %p235_p0 }
   0xa   :  { %243 = shalt.err (!%p240_p2)
}
   0xb   :  { %s244_s23 = scalar_lea.vmem %s20_s13, 128  ;;  %p249_p4 = scmp.lt.s32.totalorder %s20_s13, %s20_s13 }
   0xc   :  { %p245_p3 = scmp.ne.s32.totalorder %s20_s13, %s244_s23  ;;  %p250_p5 = scmp.lt.s32.totalorder %s244_s23, %s244_s23 }
   0xe   :  { %p251_p6 = por %p250_p5, %p249_p4 }
  0x10   :  { %p252_p7 = pnand %p251_p6, %p245_p3 }
  0x12   :  { %255 = shalt.err (!%p252_p7)
}
  0x13   :  { %22 = dma.hbm_to_vmem [thread:$0]  %s420_s0, 128, %s20_s13, [#allocation3]  }
  0x14   :  { %s256_s28 = scalar_lea.hbm %s421_s1, 1024 }
  0x15   :  { %p257_p8 = scmp.ne.s32.totalorder %s421_s1, %s256_s28  ;;  %p260_p9 = scmp.lt.u32.totalorder %s256_s28, %s421_s1 }
  0x17   :  { %p262_p10 = pnand %p260_p9, %p257_p8 }
  0x19   :  { %265 = shalt.err (!%p262_p10)
}
  0x1a   :  { %s266_s6 = scalar_lea.vmem %s358_s15, 1024  ;;  %p271_p12 = scmp.lt.s32.totalorder %s358_s15, %s358_s15 }
  0x1b   :  { %p267_p11 = scmp.ne.s32.totalorder %s358_s15, %s266_s6  ;;  %p272_p13 = scmp.lt.s32.totalorder %s266_s6, %s266_s6 }
  0x1d   :  { %p273_p0 = por %p272_p13, %p271_p12 }
  0x1f   :  { %p274_p1 = pnand %p273_p0, %p267_p11 }
  0x21   :  { %277 = shalt.err (!%p274_p1)
}
  0x22   :  { %s332_s0 = smov 64   ;;  %s333_s7 = smov 4  }
  0x23   :  { %34 = dma.hbm_to_vmem [thread:$0]  %s421_s1, 1024, %s358_s15, [#allocation6], %s332_s0, %s332_s0, %s333_s7  }
  0x24   :  { %322 = dma.done.wait [#allocation3], 128  }
  0x25   :  { %323 = vsyncadd [#allocation3], 4294967168 }
  0x26   :  { %324 = dma.done.wait [#allocation6], 1024  }
  0x27   :  { %325 = vsyncadd [#allocation6], 4294966272  ;;  %v334_v0 = vmov 0.0   ;;  %vm335_vm0 = vmmov 0   ;;  %v226_v1 = vld [vmem:[#allocation5] sm:$0xff]   ;;  %v227_v2 = vld [vmem:[#allocation5 + $0x8] sm:$0xff]  }
  0x28   :  { %198 = vmatprep.subr.bf16.mxu0 %v334_v0  ;;  %214 = vmatprep.mubr.msk.bf16.mxu0 %vm335_vm0, %v334_v0  ;;  %v228_v3 = vld [vmem:[#allocation5 + $0x10] sm:$0xff]   ;;  %v229_v4 = vld [vmem:[#allocation5 + $0x18] sm:$0xff]   ;;  %v230_v5 = vld [vmem:[#allocation5 + $0x20] sm:$0xff]   ;;  %s336_s1 = smov [#allocation7]   ;;  %s337_s11 = smov [#allocation8]  }
  0x29   :  { %199 = vmatpush3.bf16.msra.mxu0 %v226_v1  ;;  %v231_v6 = vld [vmem:[#allocation5 + $0x28] sm:$0xff]   ;;  %v232_v7 = vld [vmem:[#allocation5 + $0x30] sm:$0xff]   ;;  %v233_v8 = vld [vmem:[#allocation5 + $0x38] sm:$0xff]   ;;  %s157_s10 = sshll.u32 %s336_s1, 4  ;;  %s167_s12 = sshll.u32 %s337_s11, 4  ;;  %s158_s10 = int_to_ptr.vmem [resolvable:$true] %s157_s10  ;;  %s389_s12 = int_to_ptr.vmem [resolvable:$true] %s167_s12 }
  0x2a   :  { %200 = vmatprep.subr.bf16.mxu0 %v334_v0  ;;  %v42_v9 = vld [vmem:[#allocation2] sm:$0xff]  ;;  %s278_s13 = scalar_lea.vmem %s158_s10, 128  ;;  %p283_p3 = scmp.lt.s32.totalorder %s158_s10, %s158_s10 }
  0x2b   :  { %v43_v10 = vpack.c.bf16 %v42_v9, %v42_v9  ;;  %p279_p2 = scmp.ne.s32.totalorder %s158_s10, %s278_s13  ;;  %p284_p4 = scmp.lt.s32.totalorder %s278_s13, %s278_s13 }
  0x2d   :  { %201 = vmatpush3.bf16.msra.mxu0 %v227_v2  ;;  %p285_p5 = por %p284_p4, %p283_p3 }
  0x2e   :  { %202 = vmatprep.subr.bf16.mxu0 %v334_v0 }
  0x2f   :  { %p286_p6 = pnand %p285_p5, %p279_p2 }
  0x31   :  { %203 = vmatpush3.bf16.msra.mxu0 %v228_v3 }
  0x32   :  { %204 = vmatprep.subr.bf16.mxu0 %v334_v0 }
  0x35   :  { %205 = vmatpush3.bf16.msra.mxu0 %v229_v4 }
  0x36   :  { %206 = vmatprep.subr.bf16.mxu0 %v334_v0 }
  0x39   :  { %207 = vmatpush3.bf16.msra.mxu0 %v230_v5 }
  0x3a   :  { %208 = vmatprep.subr.bf16.mxu0 %v334_v0 }
  0x3d   :  { %209 = vmatpush3.bf16.msra.mxu0 %v231_v6 }
  0x3e   :  { %210 = vmatprep.subr.bf16.mxu0 %v334_v0 }
  0x41   :  { %211 = vmatpush3.bf16.msra.mxu0 %v232_v7 }
  0x42   :  { %212 = vmatprep.subr.bf16.mxu0 %v334_v0 }
  0x45   :  { %213 = vmatpush3.bf16.msra.mxu0 %v233_v8 }
  0x48   :  { %215 = vmatmul.mubr.bf16.vlgmr.msra.gmra.mrb[0].mxu0 %v43_v10 }
 0x11b   :  { %v142_v11 = vpop.f32.mrb[0].mxu0 }
 0x11c   :  { %v149_v12 = vsub.f32 %v42_v9, %v142_v11  ;;  %148 = vst [vmem:[#allocation7] sm:$0xff] %v142_v11  ;;  %v216_v13 = vpop.f32.mrb[1].mxu0 }
 0x11d   :  { %v145_v14 = vpop.f32.mrb[2].mxu0 }
 0x11e   :  { %289 = shalt.err (!%p286_p6)
}
 0x11f   :  { %s290_s16 = scalar_lea.hbm %s422_s2, 128 }
 0x120   :  { %p291_p7 = scmp.ne.s32.totalorder %s422_s2, %s290_s16  ;;  %p294_p8 = scmp.lt.u32.totalorder %s290_s16, %s422_s2 }
 0x122   :  { %p296_p9 = pnand %p294_p8, %p291_p7 }
 0x124   :  { %299 = shalt.err (!%p296_p9)
}
 0x125   :  { %160 = dma.vmem_to_hbm [thread:$0]  %s158_s10, 128, %s422_s2, [#allocation4]   ;;  %150 = vst [vmem:[#allocation8] sm:$0xff] %v149_v12  ;;  %v217_v15 = vpop.f32.mrb[3].mxu0 }
 0x126   :  { %s300_s23 = scalar_lea.vmem %s389_s12, 128  ;;  %p305_p11 = scmp.lt.s32.totalorder %s389_s12, %s389_s12 }
 0x127   :  { %p301_p10 = scmp.ne.s32.totalorder %s389_s12, %s300_s23  ;;  %p306_p12 = scmp.lt.s32.totalorder %s300_s23, %s300_s23 }
 0x129   :  { %p307_p13 = por %p306_p12, %p305_p11 }
 0x12b   :  { %p308_p0 = pnand %p307_p13, %p301_p10 }
 0x12d   :  { %311 = shalt.err (!%p308_p0)
}
 0x12e   :  { %s312_s26 = scalar_lea.hbm %s423_s3, 128 }
 0x12f   :  { %p313_p1 = scmp.ne.s32.totalorder %s423_s3, %s312_s26  ;;  %p316_p2 = scmp.lt.u32.totalorder %s312_s26, %s423_s3 }
 0x131   :  { %p318_p3 = pnand %p316_p2, %p313_p1 }
 0x133   :  { %321 = shalt.err (!%p318_p3)
}
 0x134   :  { %170 = dma.vmem_to_hbm [thread:$0]  %s389_s12, 128, %s423_s3, [#allocation9]  }
 0x135   :  { %326 = dma.done.wait [#allocation4], 128  }
 0x136   :  { %327 = vsyncadd [#allocation4], 4294967168 }
 0x137   :  { %328 = dma.done.wait [#allocation9], 128  }
 0x138   :  { %329 = vsyncadd [#allocation9], 4294967168 }
 0x139   :  { %177 = vsyncpa [#allocation3], 1 }
 0x13a   :  { %178 = vsyncpa [#allocation6], 1 }
 0x13b   :  { %179 = vsyncpa [#allocation4], 1 }
 0x13c   :  { %180 = vsyncpa [#allocation9], 1 }

</bundles_post_ra>
